<compile_context>
chip_gen: v7x
topology: tpu7x:2x2x1
jax: 0.10.0
libtpu: 0.0.40
codegen_flags: <defaults>
</compile_context>

<pallas_src>
import math

import jax
import jax.numpy as jnp
from jax.experimental import pallas as pl
from jax.experimental.pallas import tpu as pltpu


def _pe_add_kernel(x_ref, pe_ref, o_ref):
    # Hot path: elementwise add, pe broadcast over the batch (sublane) axis.
    # x_ref:  (TS, B, D)
    # pe_ref: (TS, 1, D)  -> broadcasts to (TS, B, D)
    o_ref[...] = x_ref[...] + pe_ref[...]


def make_positional_encoding_table(d_model: int, max_len: int = 5000,
                                   dtype=jnp.float32) -> jnp.ndarray:
    """Parameter-free buffer `pe` of shape (max_len, 1, d_model), in `dtype`.

    Build it once in the model dtype so the forward pass never has to cast.
    """
    assert d_model % 2 == 0, "d_model must be even (sin/cos interleave)"
    position = jnp.arange(max_len, dtype=jnp.float32)[:, None]            # (max_len, 1)
    div_term = jnp.exp(
        jnp.arange(0, d_model, 2, dtype=jnp.float32) * (-math.log(10000.0) / d_model)
    )                                                                      # (d_model//2,)
    pe = jnp.zeros((max_len, 1, d_model), dtype=jnp.float32)
    pe = pe.at[:, 0, 0::2].set(jnp.sin(position * div_term))
    pe = pe.at[:, 0, 1::2].set(jnp.cos(position * div_term))
    return pe.astype(dtype)


def _choose_seq_tile(S: int, B: int, D: int, itemsize: int, *,
                     vmem_budget_bytes: int = 16 << 20,
                     min_block_bytes: int = 1 << 20,
                     target_grid_steps: int = 8) -> int:
    """Largest divisor of S whose double-buffered working set fits the budget,
    preferring >= `target_grid_steps` grid steps (pipelining + v7x megacore)
    but never shrinking an x-block below ~`min_block_bytes`."""
    # Double-buffered working set per sequence row: 2*x + 2*out + 2*pe.
    bytes_per_row_ws = (4 * B * D + 2 * D) * itemsize
    vmem_rows = max(1, vmem_budget_bytes // bytes_per_row_ws)
    # Keep per-step DMA large enough to amortize ~0.35 us grid-step overhead.
    min_rows = max(1, min_block_bytes // max(1, B * D * itemsize))
    target = max(min_rows, (S + target_grid_steps - 1) // target_grid_steps)
    target = min(target, vmem_rows, S)
    for cand in range(target, 0, -1):   # largest exact divisor of S <= target
        if S % cand == 0:
            return cand
    return 1


def positional_encoding_forward(x: jnp.ndarray, pe: jnp.ndarray, *,
                                seq_tile: int | None = None,
                                vmem_budget_bytes: int = 16 << 20) -> jnp.ndarray:
    """x: (S, B, D); pe: (max_len, 1, D) full table. Returns x + pe[:S]
    (eval-mode dropout is identity)."""
    S, B, D = x.shape
    max_len, pe_one, pe_d = pe.shape
    assert pe_one == 1 and pe_d == D, "pe must have shape (max_len, 1, d_model)"
    assert S <= max_len, f"sequence length {S} exceeds pe max_len {max_len}"

    if pe.dtype != x.dtype:
        # Avoid this path in practice: build the table with dtype=x.dtype so no
        # per-call full-pe cast (an extra XLA op / HBM pass) is ever emitted.
        pe = pe.astype(x.dtype)

    itemsize = x.dtype.itemsize
    if seq_tile is None:
        ts = _choose_seq_tile(S, B, D, itemsize, vmem_budget_bytes=vmem_budget_bytes)
    else:
        ts = int(seq_tile)
        assert ts >= 1 and S % ts == 0, "seq_tile must divide sequence length"
    grid = (S // ts,)

    return pl.pallas_call(
        _pe_add_kernel,
        out_shape=jax.ShapeDtypeStruct((S, B, D), x.dtype),
        grid_spec=pltpu.PrefetchScalarGridSpec(
            num_scalar_prefetch=0,
            grid=grid,
            in_specs=[
                # Contiguous (ts, B, D) x-block; minor dims equal full (B, D).
                pl.BlockSpec((ts, B, D), lambda i: (i, 0, 0)),
                # Blocks of the FULL pe table; only blocks 0..S/ts-1 are touched.
                pl.BlockSpec((ts, 1, D), lambda i: (i, 0, 0)),
            ],
            out_specs=pl.BlockSpec((ts, B, D), lambda i: (i, 0, 0)),
        ),
        compiler_params=pltpu.CompilerParams(
            # Seq tiles are independent -> pipelined + sharded across v7x's 2 TCs.
            dimension_semantics=("parallel",),
            # Explicit scoped-VMEM limit; block sizing budgets ~16 MiB working
            # set, so 32 MiB is safe on v5e/v6e/v7x alike.
            vmem_limit_bytes=32 * 1024 * 1024,
        ),
    )(x, pe)


if __name__ == "__main__":
    # Small shapes implied by the forward: x is (seq_len, batch, d_model).
    SEQ, BATCH, D_MODEL = 64, 4, 32
    MAX_LEN = 128  # keep the buffer small for the test (module default is 5000)

    key = jax.random.PRNGKey(0)
    x = jax.random.normal(key, (SEQ, BATCH, D_MODEL), dtype=jnp.float32)
    pe = make_positional_encoding_table(D_MODEL, MAX_LEN, dtype=jnp.float32)

    # Reference (pure JAX): x + pe[:S]; dropout is identity in eval mode.
    ref = x + pe[:SEQ]

    # 1) Auto-tiled path.
    out = jax.block_until_ready(positional_encoding_forward(x, pe))
    assert out.shape == (SEQ, BATCH, D_MODEL)
    assert jnp.allclose(out, ref, atol=1e-6, rtol=1e-6)

    # 2) Explicit multi-step grid (grid=(4,)): exercises the software pipeline
    #    and full-pe-table block indexing beyond block 0.
    out_tiled = jax.block_until_ready(positional_encoding_forward(x, pe, seq_tile=16))
    assert jnp.allclose(out_tiled, ref, atol=1e-6, rtol=1e-6)

    print("KERNEL_OK")
</pallas_src>

<mosaic_0001>
module attributes {stable_mosaic.version = 11 : i64} {
  func.func @_pe_add_kernel(%arg0: i32, %arg1: memref<64x4x32xf32, #tpu.memory_space<vmem>>, %arg2: memref<64x1x32xf32, #tpu.memory_space<vmem>>, %arg3: memref<64x4x32xf32, #tpu.memory_space<vmem>>) attributes {dimension_semantics = [#tpu.dimension_semantics<parallel>], iteration_bounds = array<i64: 1>, scalar_prefetch = 0 : i64, scratch_operands = 0 : i64, tpu.core_type = #tpu.core_type<tc>, window_params = [{transform_indices = @transform_0, window_bounds = array<i64: 64, 4, 32>}, {transform_indices = @transform_1, window_bounds = array<i64: 64, 1, 32>}, {transform_indices = @transform_2, window_bounds = array<i64: 64, 4, 32>}]} {
    %c0 = arith.constant 0 : index
    %c0_0 = arith.constant 0 : index
    %c0_1 = arith.constant 0 : index
    %0 = vector.load %arg1[%c0, %c0_0, %c0_1] : memref<64x4x32xf32, #tpu.memory_space<vmem>>, vector<64x4x32xf32>
    %c0_2 = arith.constant 0 : index
    %c0_3 = arith.constant 0 : index
    %c0_4 = arith.constant 0 : index
    %1 = vector.load %arg2[%c0_2, %c0_3, %c0_4] : memref<64x1x32xf32, #tpu.memory_space<vmem>>, vector<64x1x32xf32>
    %2 = vector.broadcast %1 : vector<64x1x32xf32> to vector<64x4x32xf32>
    %3 = arith.addf %0, %2 : vector<64x4x32xf32>
    %c0_5 = arith.constant 0 : index
    %c0_6 = arith.constant 0 : index
    %c0_7 = arith.constant 0 : index
    %4 = vector.load %arg3[%c0_5, %c0_6, %c0_7] : memref<64x4x32xf32, #tpu.memory_space<vmem>>, vector<64x4x32xf32>
    tpu.vector_store %arg3[%c0_5, %c0_6, %c0_7], %3 {strides = array<i32>} : memref<64x4x32xf32, #tpu.memory_space<vmem>>, vector<64x4x32xf32>,
    return
  }
  func.func @transform_0(%arg0: i32) -> (i32, i32, i32) {
    %c0_i32 = arith.constant 0 : i32
    %c0_i32_0 = arith.constant 0 : i32
    %c0_i32_1 = arith.constant 0 : i32
    return %arg0, %c0_i32, %c0_i32_0 : i32, i32, i32
  }
  func.func @transform_1(%arg0: i32) -> (i32, i32, i32) {
    %c0_i32 = arith.constant 0 : i32
    %c0_i32_0 = arith.constant 0 : i32
    %c0_i32_1 = arith.constant 0 : i32
    return %arg0, %c0_i32, %c0_i32_0 : i32, i32, i32
  }
  func.func @transform_2(%arg0: i32) -> (i32, i32, i32) {
    %c0_i32 = arith.constant 0 : i32
    %c0_i32_0 = arith.constant 0 : i32
    %c0_i32_1 = arith.constant 0 : i32
    return %arg0, %c0_i32, %c0_i32_0 : i32, i32, i32
  }
}

</mosaic_0001>

<bundles_post_ra>
// kernel: tpu_custom_call.1
= control target key start
LH: loop header
LB: loop body
LE: loop exit
PB: predicated region body
PF: predicated region fallthrough
CT: control target
= control target key end

     0   :  { %vm587_vm0 = vcmask 257024   ;;  %s1375_s0 = inlined_call_operand.vmem [shape: f32[64,4,32], index: 0, kind: input, shape index: {}]   ;;  %s1376_s1 = inlined_call_operand.vmem [shape: f32[128,1,32], index: 1, kind: input, shape index: {}]   ;;  %s1377_s2 = inlined_call_operand.vmem [shape: f32[64,4,32], index: 2, kind: output, shape index: {}]  }
   0x1   :  { %v11_v0 = vld [vmem:[%s1375_s0] sm:$0xf]  ;;  %v12_v2 = vld [vmem:[%s1375_s0 + $0x4] sm:$0xf]  ;;  %v13_v5 = vld [vmem:[%s1375_s0 + $0x8] sm:$0xf] }
   0x2   :  { %v656_v1 = vld [vmem:[%s1376_s1] ss:$0 sm:$0xff]  ;;  %v657_v4 = vld [vmem:[%s1376_s1 + $0x1] ss:$0 sm:$0xff]  ;;  %v658_v6 = vld [vmem:[%s1376_s1 + $0x2] ss:$0 sm:$0xff] }
   0x3   :  { %v523_v3 = vadd.f32 %v656_v1, %v11_v0  ;;  %v524_v7 = vadd.f32 %v657_v4, %v12_v2  ;;  %v525_v8 = vadd.f32 %v658_v6, %v13_v5  ;;  %v14_v9 = vld [vmem:[%s1375_s0 + $0xc] sm:$0xf]  ;;  %v659_v10 = vld [vmem:[%s1376_s1 + $0x3] ss:$0 sm:$0xff]  ;;  %v15_v11 = vld [vmem:[%s1375_s0 + $0x10] sm:$0xf] }
   0x4   :  { %v526_v12 = vadd.f32 %v659_v10, %v14_v9  ;;  %v660_v13 = vld [vmem:[%s1376_s1 + $0x4] ss:$0 sm:$0xff]  ;;  %v16_v14 = vld [vmem:[%s1375_s0 + $0x14] sm:$0xf]  ;;  %v661_v15 = vld [vmem:[%s1376_s1 + $0x5] ss:$0 sm:$0xff] }
   0x5   :  { %588 = vst.msk [vmem:[%s1377_s2] sm:$0xf] %vm587_vm0, %v523_v3  ;;  %589 = vst.msk [vmem:[%s1377_s2 + $0x4] sm:$0xf] %vm587_vm0, %v524_v7  ;;  %v527_v16 = vadd.f32 %v660_v13, %v15_v11  ;;  %v528_v17 = vadd.f32 %v661_v15, %v16_v14  ;;  %v17_v18 = vld [vmem:[%s1375_s0 + $0x18] sm:$0xf] }
   0x6   :  { %590 = vst.msk [vmem:[%s1377_s2 + $0x8] sm:$0xf] %vm587_vm0, %v525_v8  ;;  %v662_v19 = vld [vmem:[%s1376_s1 + $0x6] ss:$0 sm:$0xff]  ;;  %v18_v20 = vld [vmem:[%s1375_s0 + $0x1c] sm:$0xf] }
   0x7   :  { %591 = vst.msk [vmem:[%s1377_s2 + $0xc] sm:$0xf] %vm587_vm0, %v526_v12  ;;  %v529_v21 = vadd.f32 %v662_v19, %v17_v18  ;;  %v663_v22 = vld [vmem:[%s1376_s1 + $0x7] ss:$0 sm:$0xff]  ;;  %v19_v23 = vld [vmem:[%s1375_s0 + $0x20] sm:$0xf] }
   0x8   :  { %v664_v24 = vld [vmem:[%s1376_s1 + $0x8] ss:$0 sm:$0xff]  ;;  %592 = vst.msk [vmem:[%s1377_s2 + $0x10] sm:$0xf] %vm587_vm0, %v527_v16  ;;  %593 = vst.msk [vmem:[%s1377_s2 + $0x14] sm:$0xf] %vm587_vm0, %v528_v17  ;;  %v530_v25 = vadd.f32 %v663_v22, %v18_v20 }
   0x9   :  { %v531_v26 = vadd.f32 %v664_v24, %v19_v23  ;;  %v20_v27 = vld [vmem:[%s1375_s0 + $0x24] sm:$0xf]  ;;  %v665_v28 = vld [vmem:[%s1376_s1 + $0x9] ss:$0 sm:$0xff]  ;;  %594 = vst.msk [vmem:[%s1377_s2 + $0x18] sm:$0xf] %vm587_vm0, %v529_v21 }
   0xa   :  { %v21_v29 = vld [vmem:[%s1375_s0 + $0x28] sm:$0xf]  ;;  %v532_v30 = vadd.f32 %v665_v28, %v20_v27  ;;  %v22_v32 = vld [vmem:[%s1375_s0 + $0x2c] sm:$0xf]  ;;  %595 = vst.msk [vmem:[%s1377_s2 + $0x1c] sm:$0xf] %vm587_vm0, %v530_v25 }
   0xb   :  { %v666_v31 = vld [vmem:[%s1376_s1 + $0xa] ss:$0 sm:$0xff]  ;;  %v667_v33 = vld [vmem:[%s1376_s1 + $0xb] ss:$0 sm:$0xff]  ;;  %596 = vst.msk [vmem:[%s1377_s2 + $0x20] sm:$0xf] %vm587_vm0, %v531_v26 }
   0xc   :  { %v533_v34 = vadd.f32 %v666_v31, %v21_v29  ;;  %v534_v35 = vadd.f32 %v667_v33, %v22_v32  ;;  %v23_v36 = vld [vmem:[%s1375_s0 + $0x30] sm:$0xf]  ;;  %v668_v37 = vld [vmem:[%s1376_s1 + $0xc] ss:$0 sm:$0xff]  ;;  %v24_v38 = vld [vmem:[%s1375_s0 + $0x34] sm:$0xf] }
   0xd   :  { %597 = vst.msk [vmem:[%s1377_s2 + $0x24] sm:$0xf] %vm587_vm0, %v532_v30  ;;  %v535_v39 = vadd.f32 %v668_v37, %v23_v36  ;;  %v669_v40 = vld [vmem:[%s1376_s1 + $0xd] ss:$0 sm:$0xff]  ;;  %v25_v41 = vld [vmem:[%s1375_s0 + $0x38] sm:$0xf] }
   0xe   :  { %v670_v42 = vld [vmem:[%s1376_s1 + $0xe] ss:$0 sm:$0xff]  ;;  %598 = vst.msk [vmem:[%s1377_s2 + $0x28] sm:$0xf] %vm587_vm0, %v533_v34  ;;  %599 = vst.msk [vmem:[%s1377_s2 + $0x2c] sm:$0xf] %vm587_vm0, %v534_v35  ;;  %v536_v43 = vadd.f32 %v669_v40, %v24_v38 }
   0xf   :  { %v537_v44 = vadd.f32 %v670_v42, %v25_v41  ;;  %v26_v45 = vld [vmem:[%s1375_s0 + $0x3c] sm:$0xf]  ;;  %v671_v46 = vld [vmem:[%s1376_s1 + $0xf] ss:$0 sm:$0xff]  ;;  %v27_v47 = vld [vmem:[%s1375_s0 + $0x40] sm:$0xf] }
  0x10   :  { %600 = vst.msk [vmem:[%s1377_s2 + $0x30] sm:$0xf] %vm587_vm0, %v535_v39  ;;  %v538_v48 = vadd.f32 %v671_v46, %v26_v45  ;;  %v672_v49 = vld [vmem:[%s1376_s1 + $0x10] ss:$0 sm:$0xff]  ;;  %v28_v50 = vld [vmem:[%s1375_s0 + $0x44] sm:$0xf] }
  0x11   :  { %v673_v51 = vld [vmem:[%s1376_s1 + $0x11] ss:$0 sm:$0xff]  ;;  %601 = vst.msk [vmem:[%s1377_s2 + $0x34] sm:$0xf] %vm587_vm0, %v536_v43  ;;  %602 = vst.msk [vmem:[%s1377_s2 + $0x38] sm:$0xf] %vm587_vm0, %v537_v44  ;;  %v539_v52 = vadd.f32 %v672_v49, %v27_v47 }
  0x12   :  { %v540_v53 = vadd.f32 %v673_v51, %v28_v50  ;;  %v29_v54 = vld [vmem:[%s1375_s0 + $0x48] sm:$0xf]  ;;  %v674_v55 = vld [vmem:[%s1376_s1 + $0x12] ss:$0 sm:$0xff]  ;;  %v30_v56 = vld [vmem:[%s1375_s0 + $0x4c] sm:$0xf] }
  0x13   :  { %603 = vst.msk [vmem:[%s1377_s2 + $0x3c] sm:$0xf] %vm587_vm0, %v538_v48  ;;  %v541_v57 = vadd.f32 %v674_v55, %v29_v54  ;;  %v675_v58 = vld [vmem:[%s1376_s1 + $0x13] ss:$0 sm:$0xff]  ;;  %v676_v60 = vld [vmem:[%s1376_s1 + $0x14] ss:$0 sm:$0xff] }
  0x14   :  { %v31_v59 = vld [vmem:[%s1375_s0 + $0x50] sm:$0xf]  ;;  %604 = vst.msk [vmem:[%s1377_s2 + $0x40] sm:$0xf] %vm587_vm0, %v539_v52  ;;  %605 = vst.msk [vmem:[%s1377_s2 + $0x44] sm:$0xf] %vm587_vm0, %v540_v53  ;;  %v542_v61 = vadd.f32 %v675_v58, %v30_v56 }
  0x15   :  { %v543_v62 = vadd.f32 %v676_v60, %v31_v59  ;;  %v32_v63 = vld [vmem:[%s1375_s0 + $0x54] sm:$0xf]  ;;  %v33_v1 = vld [vmem:[%s1375_s0 + $0x58] sm:$0xf]  ;;  %606 = vst.msk [vmem:[%s1377_s2 + $0x48] sm:$0xf] %vm587_vm0, %v541_v57 }
  0x16   :  { %v677_v0 = vld [vmem:[%s1376_s1 + $0x15] ss:$0 sm:$0xff]  ;;  %v678_v3 = vld [vmem:[%s1376_s1 + $0x16] ss:$0 sm:$0xff]  ;;  %v34_v4 = vld [vmem:[%s1375_s0 + $0x5c] sm:$0xf] }
  0x17   :  { %v544_v2 = vadd.f32 %v677_v0, %v32_v63  ;;  %v679_v5 = vld [vmem:[%s1376_s1 + $0x17] ss:$0 sm:$0xff]  ;;  %607 = vst.msk [vmem:[%s1377_s2 + $0x4c] sm:$0xf] %vm587_vm0, %v542_v61  ;;  %608 = vst.msk [vmem:[%s1377_s2 + $0x50] sm:$0xf] %vm587_vm0, %v543_v62  ;;  %v545_v6 = vadd.f32 %v678_v3, %v33_v1 }
  0x18   :  { %v546_v7 = vadd.f32 %v679_v5, %v34_v4  ;;  %v35_v8 = vld [vmem:[%s1375_s0 + $0x60] sm:$0xf]  ;;  %v680_v9 = vld [vmem:[%s1376_s1 + $0x18] ss:$0 sm:$0xff]  ;;  %v36_v10 = vld [vmem:[%s1375_s0 + $0x64] sm:$0xf] }
  0x19   :  { %609 = vst.msk [vmem:[%s1377_s2 + $0x54] sm:$0xf] %vm587_vm0, %v544_v2  ;;  %v547_v11 = vadd.f32 %v680_v9, %v35_v8  ;;  %v681_v12 = vld [vmem:[%s1376_s1 + $0x19] ss:$0 sm:$0xff]  ;;  %v37_v13 = vld [vmem:[%s1375_s0 + $0x68] sm:$0xf] }
  0x1a   :  { %v682_v14 = vld [vmem:[%s1376_s1 + $0x1a] ss:$0 sm:$0xff]  ;;  %610 = vst.msk [vmem:[%s1377_s2 + $0x58] sm:$0xf] %vm587_vm0, %v545_v6  ;;  %611 = vst.msk [vmem:[%s1377_s2 + $0x5c] sm:$0xf] %vm587_vm0, %v546_v7  ;;  %v548_v15 = vadd.f32 %v681_v12, %v36_v10 }
  0x1b   :  { %v549_v16 = vadd.f32 %v682_v14, %v37_v13  ;;  %v38_v17 = vld [vmem:[%s1375_s0 + $0x6c] sm:$0xf]  ;;  %v683_v18 = vld [vmem:[%s1376_s1 + $0x1b] ss:$0 sm:$0xff]  ;;  %v39_v19 = vld [vmem:[%s1375_s0 + $0x70] sm:$0xf] }
  0x1c   :  { %612 = vst.msk [vmem:[%s1377_s2 + $0x60] sm:$0xf] %vm587_vm0, %v547_v11  ;;  %v550_v20 = vadd.f32 %v683_v18, %v38_v17  ;;  %v684_v21 = vld [vmem:[%s1376_s1 + $0x1c] ss:$0 sm:$0xff]  ;;  %v40_v22 = vld [vmem:[%s1375_s0 + $0x74] sm:$0xf] }
  0x1d   :  { %v685_v23 = vld [vmem:[%s1376_s1 + $0x1d] ss:$0 sm:$0xff]  ;;  %613 = vst.msk [vmem:[%s1377_s2 + $0x64] sm:$0xf] %vm587_vm0, %v548_v15  ;;  %614 = vst.msk [vmem:[%s1377_s2 + $0x68] sm:$0xf] %vm587_vm0, %v549_v16  ;;  %v551_v24 = vadd.f32 %v684_v21, %v39_v19 }
  0x1e   :  { %v552_v25 = vadd.f32 %v685_v23, %v40_v22  ;;  %v41_v26 = vld [vmem:[%s1375_s0 + $0x78] sm:$0xf]  ;;  %v686_v27 = vld [vmem:[%s1376_s1 + $0x1e] ss:$0 sm:$0xff]  ;;  %615 = vst.msk [vmem:[%s1377_s2 + $0x6c] sm:$0xf] %vm587_vm0, %v550_v20 }
  0x1f   :  { %v42_v28 = vld [vmem:[%s1375_s0 + $0x7c] sm:$0xf]  ;;  %v553_v29 = vadd.f32 %v686_v27, %v41_v26  ;;  %v43_v31 = vld [vmem:[%s1375_s0 + $0x80] sm:$0xf]  ;;  %616 = vst.msk [vmem:[%s1377_s2 + $0x70] sm:$0xf] %vm587_vm0, %v551_v24 }
  0x20   :  { %v687_v30 = vld [vmem:[%s1376_s1 + $0x1f] ss:$0 sm:$0xff]  ;;  %v688_v32 = vld [vmem:[%s1376_s1 + $0x20] ss:$0 sm:$0xff]  ;;  %617 = vst.msk [vmem:[%s1377_s2 + $0x74] sm:$0xf] %vm587_vm0, %v552_v25 }
  0x21   :  { %v554_v33 = vadd.f32 %v687_v30, %v42_v28  ;;  %v555_v34 = vadd.f32 %v688_v32, %v43_v31  ;;  %v44_v35 = vld [vmem:[%s1375_s0 + $0x84] sm:$0xf]  ;;  %v689_v36 = vld [vmem:[%s1376_s1 + $0x21] ss:$0 sm:$0xff]  ;;  %v45_v37 = vld [vmem:[%s1375_s0 + $0x88] sm:$0xf] }
  0x22   :  { %618 = vst.msk [vmem:[%s1377_s2 + $0x78] sm:$0xf] %vm587_vm0, %v553_v29  ;;  %v556_v38 = vadd.f32 %v689_v36, %v44_v35  ;;  %v690_v39 = vld [vmem:[%s1376_s1 + $0x22] ss:$0 sm:$0xff]  ;;  %v46_v40 = vld [vmem:[%s1375_s0 + $0x8c] sm:$0xf] }
  0x23   :  { %v691_v41 = vld [vmem:[%s1376_s1 + $0x23] ss:$0 sm:$0xff]  ;;  %619 = vst.msk [vmem:[%s1377_s2 + $0x7c] sm:$0xf] %vm587_vm0, %v554_v33  ;;  %620 = vst.msk [vmem:[%s1377_s2 + $0x80] sm:$0xf] %vm587_vm0, %v555_v34  ;;  %v557_v42 = vadd.f32 %v690_v39, %v45_v37 }
  0x24   :  { %v558_v43 = vadd.f32 %v691_v41, %v46_v40  ;;  %v47_v44 = vld [vmem:[%s1375_s0 + $0x90] sm:$0xf]  ;;  %v692_v45 = vld [vmem:[%s1376_s1 + $0x24] ss:$0 sm:$0xff]  ;;  %v48_v46 = vld [vmem:[%s1375_s0 + $0x94] sm:$0xf] }
  0x25   :  { %621 = vst.msk [vmem:[%s1377_s2 + $0x84] sm:$0xf] %vm587_vm0, %v556_v38  ;;  %v559_v47 = vadd.f32 %v692_v45, %v47_v44  ;;  %v693_v48 = vld [vmem:[%s1376_s1 + $0x25] ss:$0 sm:$0xff]  ;;  %v49_v49 = vld [vmem:[%s1375_s0 + $0x98] sm:$0xf] }
  0x26   :  { %v694_v50 = vld [vmem:[%s1376_s1 + $0x26] ss:$0 sm:$0xff]  ;;  %622 = vst.msk [vmem:[%s1377_s2 + $0x88] sm:$0xf] %vm587_vm0, %v557_v42  ;;  %623 = vst.msk [vmem:[%s1377_s2 + $0x8c] sm:$0xf] %vm587_vm0, %v558_v43  ;;  %v560_v51 = vadd.f32 %v693_v48, %v48_v46 }
  0x27   :  { %v561_v52 = vadd.f32 %v694_v50, %v49_v49  ;;  %v50_v53 = vld [vmem:[%s1375_s0 + $0x9c] sm:$0xf]  ;;  %v695_v54 = vld [vmem:[%s1376_s1 + $0x27] ss:$0 sm:$0xff]  ;;  %v51_v55 = vld [vmem:[%s1375_s0 + $0xa0] sm:$0xf] }
  0x28   :  { %624 = vst.msk [vmem:[%s1377_s2 + $0x90] sm:$0xf] %vm587_vm0, %v559_v47  ;;  %v562_v56 = vadd.f32 %v695_v54, %v50_v53  ;;  %v696_v57 = vld [vmem:[%s1376_s1 + $0x28] ss:$0 sm:$0xff]  ;;  %v52_v58 = vld [vmem:[%s1375_s0 + $0xa4] sm:$0xf] }
  0x29   :  { %v697_v59 = vld [vmem:[%s1376_s1 + $0x29] ss:$0 sm:$0xff]  ;;  %625 = vst.msk [vmem:[%s1377_s2 + $0x94] sm:$0xf] %vm587_vm0, %v560_v51  ;;  %626 = vst.msk [vmem:[%s1377_s2 + $0x98] sm:$0xf] %vm587_vm0, %v561_v52  ;;  %v563_v60 = vadd.f32 %v696_v57, %v51_v55 }
  0x2a   :  { %v564_v61 = vadd.f32 %v697_v59, %v52_v58  ;;  %v53_v62 = vld [vmem:[%s1375_s0 + $0xa8] sm:$0xf]  ;;  %v54_v0 = vld [vmem:[%s1375_s0 + $0xac] sm:$0xf]  ;;  %627 = vst.msk [vmem:[%s1377_s2 + $0x9c] sm:$0xf] %vm587_vm0, %v562_v56 }
  0x2b   :  { %v698_v63 = vld [vmem:[%s1376_s1 + $0x2a] ss:$0 sm:$0xff]  ;;  %v699_v2 = vld [vmem:[%s1376_s1 + $0x2b] ss:$0 sm:$0xff]  ;;  %v55_v3 = vld [vmem:[%s1375_s0 + $0xb0] sm:$0xf] }
  0x2c   :  { %v565_v1 = vadd.f32 %v698_v63, %v53_v62  ;;  %v700_v4 = vld [vmem:[%s1376_s1 + $0x2c] ss:$0 sm:$0xff]  ;;  %628 = vst.msk [vmem:[%s1377_s2 + $0xa0] sm:$0xf] %vm587_vm0, %v563_v60  ;;  %629 = vst.msk [vmem:[%s1377_s2 + $0xa4] sm:$0xf] %vm587_vm0, %v564_v61  ;;  %v566_v5 = vadd.f32 %v699_v2, %v54_v0 }
  0x2d   :  { %v567_v6 = vadd.f32 %v700_v4, %v55_v3  ;;  %v56_v7 = vld [vmem:[%s1375_s0 + $0xb4] sm:$0xf]  ;;  %v701_v8 = vld [vmem:[%s1376_s1 + $0x2d] ss:$0 sm:$0xff]  ;;  %v57_v9 = vld [vmem:[%s1375_s0 + $0xb8] sm:$0xf] }
  0x2e   :  { %630 = vst.msk [vmem:[%s1377_s2 + $0xa8] sm:$0xf] %vm587_vm0, %v565_v1  ;;  %v568_v10 = vadd.f32 %v701_v8, %v56_v7  ;;  %v702_v11 = vld [vmem:[%s1376_s1 + $0x2e] ss:$0 sm:$0xff]  ;;  %v58_v12 = vld [vmem:[%s1375_s0 + $0xbc] sm:$0xf] }
  0x2f   :  { %v703_v13 = vld [vmem:[%s1376_s1 + $0x2f] ss:$0 sm:$0xff]  ;;  %631 = vst.msk [vmem:[%s1377_s2 + $0xac] sm:$0xf] %vm587_vm0, %v566_v5  ;;  %632 = vst.msk [vmem:[%s1377_s2 + $0xb0] sm:$0xf] %vm587_vm0, %v567_v6  ;;  %v569_v14 = vadd.f32 %v702_v11, %v57_v9 }
  0x30   :  { %v570_v15 = vadd.f32 %v703_v13, %v58_v12  ;;  %v59_v16 = vld [vmem:[%s1375_s0 + $0xc0] sm:$0xf]  ;;  %v704_v17 = vld [vmem:[%s1376_s1 + $0x30] ss:$0 sm:$0xff]  ;;  %v60_v18 = vld [vmem:[%s1375_s0 + $0xc4] sm:$0xf] }
  0x31   :  { %633 = vst.msk [vmem:[%s1377_s2 + $0xb4] sm:$0xf] %vm587_vm0, %v568_v10  ;;  %v571_v19 = vadd.f32 %v704_v17, %v59_v16  ;;  %v705_v20 = vld [vmem:[%s1376_s1 + $0x31] ss:$0 sm:$0xff]  ;;  %v61_v21 = vld [vmem:[%s1375_s0 + $0xc8] sm:$0xf] }
  0x32   :  { %v706_v22 = vld [vmem:[%s1376_s1 + $0x32] ss:$0 sm:$0xff]  ;;  %634 = vst.msk [vmem:[%s1377_s2 + $0xb8] sm:$0xf] %vm587_vm0, %v569_v14  ;;  %635 = vst.msk [vmem:[%s1377_s2 + $0xbc] sm:$0xf] %vm587_vm0, %v570_v15  ;;  %v572_v23 = vadd.f32 %v705_v20, %v60_v18 }
  0x33   :  { %v573_v24 = vadd.f32 %v706_v22, %v61_v21  ;;  %v62_v25 = vld [vmem:[%s1375_s0 + $0xcc] sm:$0xf]  ;;  %v707_v26 = vld [vmem:[%s1376_s1 + $0x33] ss:$0 sm:$0xff]  ;;  %636 = vst.msk [vmem:[%s1377_s2 + $0xc0] sm:$0xf] %vm587_vm0, %v571_v19 }
  0x34   :  { %v63_v27 = vld [vmem:[%s1375_s0 + $0xd0] sm:$0xf]  ;;  %v574_v28 = vadd.f32 %v707_v26, %v62_v25  ;;  %v708_v29 = vld [vmem:[%s1376_s1 + $0x34] ss:$0 sm:$0xff]  ;;  %v709_v31 = vld [vmem:[%s1376_s1 + $0x35] ss:$0 sm:$0xff] }
  0x35   :  { %v64_v30 = vld [vmem:[%s1375_s0 + $0xd4] sm:$0xf]  ;;  %637 = vst.msk [vmem:[%s1377_s2 + $0xc4] sm:$0xf] %vm587_vm0, %v572_v23  ;;  %638 = vst.msk [vmem:[%s1377_s2 + $0xc8] sm:$0xf] %vm587_vm0, %v573_v24  ;;  %v575_v32 = vadd.f32 %v708_v29, %v63_v27 }
  0x36   :  { %v576_v33 = vadd.f32 %v709_v31, %v64_v30  ;;  %v65_v34 = vld [vmem:[%s1375_s0 + $0xd8] sm:$0xf]  ;;  %v710_v35 = vld [vmem:[%s1376_s1 + $0x36] ss:$0 sm:$0xff]  ;;  %v66_v36 = vld [vmem:[%s1375_s0 + $0xdc] sm:$0xf] }
  0x37   :  { %639 = vst.msk [vmem:[%s1377_s2 + $0xcc] sm:$0xf] %vm587_vm0, %v574_v28  ;;  %v577_v37 = vadd.f32 %v710_v35, %v65_v34  ;;  %v711_v38 = vld [vmem:[%s1376_s1 + $0x37] ss:$0 sm:$0xff]  ;;  %v67_v39 = vld [vmem:[%s1375_s0 + $0xe0] sm:$0xf] }
  0x38   :  { %v712_v40 = vld [vmem:[%s1376_s1 + $0x38] ss:$0 sm:$0xff]  ;;  %640 = vst.msk [vmem:[%s1377_s2 + $0xd0] sm:$0xf] %vm587_vm0, %v575_v32  ;;  %641 = vst.msk [vmem:[%s1377_s2 + $0xd4] sm:$0xf] %vm587_vm0, %v576_v33  ;;  %v578_v41 = vadd.f32 %v711_v38, %v66_v36 }
  0x39   :  { %v579_v42 = vadd.f32 %v712_v40, %v67_v39  ;;  %v68_v43 = vld [vmem:[%s1375_s0 + $0xe4] sm:$0xf]  ;;  %v713_v44 = vld [vmem:[%s1376_s1 + $0x39] ss:$0 sm:$0xff]  ;;  %v69_v45 = vld [vmem:[%s1375_s0 + $0xe8] sm:$0xf] }
  0x3a   :  { %642 = vst.msk [vmem:[%s1377_s2 + $0xd8] sm:$0xf] %vm587_vm0, %v577_v37  ;;  %v580_v46 = vadd.f32 %v713_v44, %v68_v43  ;;  %v714_v47 = vld [vmem:[%s1376_s1 + $0x3a] ss:$0 sm:$0xff]  ;;  %v70_v48 = vld [vmem:[%s1375_s0 + $0xec] sm:$0xf] }
  0x3b   :  { %v715_v49 = vld [vmem:[%s1376_s1 + $0x3b] ss:$0 sm:$0xff]  ;;  %643 = vst.msk [vmem:[%s1377_s2 + $0xdc] sm:$0xf] %vm587_vm0, %v578_v41  ;;  %644 = vst.msk [vmem:[%s1377_s2 + $0xe0] sm:$0xf] %vm587_vm0, %v579_v42  ;;  %v581_v50 = vadd.f32 %v714_v47, %v69_v45 }
  0x3c   :  { %v582_v51 = vadd.f32 %v715_v49, %v70_v48  ;;  %v71_v52 = vld [vmem:[%s1375_s0 + $0xf0] sm:$0xf]  ;;  %v716_v53 = vld [vmem:[%s1376_s1 + $0x3c] ss:$0 sm:$0xff]  ;;  %v72_v54 = vld [vmem:[%s1375_s0 + $0xf4] sm:$0xf] }
  0x3d   :  { %645 = vst.msk [vmem:[%s1377_s2 + $0xe4] sm:$0xf] %vm587_vm0, %v580_v46  ;;  %v583_v55 = vadd.f32 %v716_v53, %v71_v52  ;;  %v717_v56 = vld [vmem:[%s1376_s1 + $0x3d] ss:$0 sm:$0xff]  ;;  %v73_v57 = vld [vmem:[%s1375_s0 + $0xf8] sm:$0xf] }
  0x3e   :  { %v718_v58 = vld [vmem:[%s1376_s1 + $0x3e] ss:$0 sm:$0xff]  ;;  %646 = vst.msk [vmem:[%s1377_s2 + $0xe8] sm:$0xf] %vm587_vm0, %v581_v50  ;;  %647 = vst.msk [vmem:[%s1377_s2 + $0xec] sm:$0xf] %vm587_vm0, %v582_v51  ;;  %v584_v59 = vadd.f32 %v717_v56, %v72_v54 }
  0x3f   :  { %v585_v60 = vadd.f32 %v718_v58, %v73_v57  ;;  %v74_v61 = vld [vmem:[%s1375_s0 + $0xfc] sm:$0xf]  ;;  %648 = vst.msk [vmem:[%s1377_s2 + $0xf0] sm:$0xf] %vm587_vm0, %v583_v55 }
  0x40   :  { %v719_v62 = vld [vmem:[%s1376_s1 + $0x3f] ss:$0 sm:$0xff]  ;;  %649 = vst.msk [vmem:[%s1377_s2 + $0xf4] sm:$0xf] %vm587_vm0, %v584_v59 }
  0x41   :  { %v586_v63 = vadd.f32 %v719_v62, %v74_v61  ;;  %650 = vst.msk [vmem:[%s1377_s2 + $0xf8] sm:$0xf] %vm587_vm0, %v585_v60 }
  0x43   :  { %651 = vst.msk [vmem:[%s1377_s2 + $0xfc] sm:$0xf] %vm587_vm0, %v586_v63 }

</bundles_post_ra>
